<compile_context>
chip_gen: v7x
topology: tpu7x:2x2x1
jax: 0.10.0
libtpu: 0.0.40
codegen_flags: <defaults>
</compile_context>

<pallas_src>
import functools

import jax
import jax.numpy as jnp
from jax.experimental import pallas as pl
from jax.experimental.pallas import tpu as pltpu

_LANE = 128
_BN_EPS = 1e-5


def _round_up(v, m):
    return (v + m - 1) // m * m


# ------------------------------ Pallas kernel ------------------------------- #

def _gin_fused_kernel(eps_ref, x_ref, a_ref, p_ref,
                      w1_ref, c1_ref, w2_ref, c2_ref,
                      wl1_ref, cl1_ref, wl2_ref, bl2_ref,
                      o_ref, *, num_layers):
    """All GIN layers + global_add_pool + lin1/BN/ReLU/lin2 head, fused.

    Per layer:  h <- relu( BN_out( MLP( (1+eps)*h + A@h ) ) )
    with        MLP(t) = relu(BN_in(t @ W1 + b1)) @ W2 + b2
    BN (eval mode) is pre-folded into (W1,c1) / (W2,c2) / (Wl1,cl1) by the
    wrapper.  Matmuls run in bf16 on the MXU with f32 accumulation.
    """
    a = a_ref[...]                         # (Np, Np) bf16, {0,1} exact
    h = x_ref[...]                         # (Np, Dp) f32
    for l in range(num_layers):            # statically unrolled (small L)
        hb = h.astype(jnp.bfloat16)
        agg = jnp.dot(a, hb, preferred_element_type=jnp.float32)
        comb = (1.0 + eps_ref[l]) * h + agg                    # GINConv combine
        z = jnp.dot(comb.astype(jnp.bfloat16), w1_ref[l],
                    preferred_element_type=jnp.float32) + c1_ref[l]
        z = jnp.maximum(z, 0.0)                                # BN(2H)+ReLU (folded)
        y = jnp.dot(z.astype(jnp.bfloat16), w2_ref[l],
                    preferred_element_type=jnp.float32) + c2_ref[l]
        h = jnp.maximum(y, 0.0)                                # outer BN+ReLU (folded)

    # Head: global_add_pool -> lin1(+folded BN) -> ReLU -> dropout(eval: id) -> lin2
    g = jnp.dot(p_ref[...], h.astype(jnp.bfloat16),
                preferred_element_type=jnp.float32)
    t = jnp.dot(g.astype(jnp.bfloat16), wl1_ref[...],
                preferred_element_type=jnp.float32) + cl1_ref[...]
    t = jnp.maximum(t, 0.0)
    o_ref[...] = jnp.dot(t.astype(jnp.bfloat16), wl2_ref[...],
                         preferred_element_type=jnp.float32) + bl2_ref[...]


# -------------------------- params / BN-fold helpers ------------------------- #

def _bn_params(dim):
    # PyTorch BatchNorm1d defaults: weight=1, bias=0, running_mean=0, running_var=1.
    return (jnp.ones((dim,), jnp.float32), jnp.zeros((dim,), jnp.float32),
            jnp.zeros((dim,), jnp.float32), jnp.ones((dim,), jnp.float32))


def _init_linear(key, fan_in, fan_out):
    kw, kb = jax.random.split(key)
    bound = 1.0 / float(fan_in) ** 0.5
    w = jax.random.uniform(kw, (fan_in, fan_out), jnp.float32, -bound, bound)
    b = jax.random.uniform(kb, (fan_out,), jnp.float32, -bound, bound)
    return w, b


def init_gin_params(key, in_dim, hidden, n_class, num_layers):
    params = {"layers": []}
    d = in_dim
    for _ in range(num_layers):
        key, k1, k2 = jax.random.split(key, 3)
        w1, b1 = _init_linear(k1, d, 2 * hidden)
        w2, b2 = _init_linear(k2, 2 * hidden, hidden)
        params["layers"].append(dict(
            eps=jnp.zeros((), jnp.float32),          # GINConv(train_eps=True) init
            w1=w1, b1=b1, w2=w2, b2=b2,
            bn_mlp=_bn_params(2 * hidden),
            bn_out=_bn_params(hidden)))
        d = hidden
    key, k1, k2 = jax.random.split(key, 3)
    params["lin1"] = _init_linear(k1, hidden, hidden)
    params["bn1"] = _bn_params(hidden)
    params["lin2"] = _init_linear(k2, hidden, n_class)
    return params


def _pad2(a, rows, cols):
    return jnp.pad(a, ((0, rows - a.shape[0]), (0, cols - a.shape[1])))


def _fold_linear_bn(w, b, bn, dp):
    """Fold eval-mode BatchNorm into the preceding Linear; pad to (dp, dp)/(1, dp)."""
    gamma, beta, mean, var = bn
    s = gamma * jax.lax.rsqrt(var + _BN_EPS)
    t = beta - mean * s
    w_f = _pad2(w * s[None, :], dp, dp).astype(jnp.bfloat16)
    c_f = jnp.pad(b * s + t, (0, dp - b.shape[0])).reshape(1, dp)
    return w_f, c_f


def _pad_linear(w, b, dp):
    w_p = _pad2(w, dp, dp).astype(jnp.bfloat16)
    b_p = jnp.pad(b, (0, dp - b.shape[0])).reshape(1, dp)
    return w_p, b_p


# --------------------------------- forward ---------------------------------- #

@functools.partial(jax.jit, static_argnames=("num_graphs",))
def gin_forward(params, x, edge_index, batch, *, num_graphs):
    """Equivalent of GIN.forward(x, edge_index, batch) (eval-mode BN / dropout)."""
    layers = params["layers"]
    num_layers = len(layers)
    n_nodes, in_dim = x.shape
    hidden = layers[0]["w2"].shape[1]
    n_class = params["lin2"][0].shape[1]
    dp = _round_up(max(in_dim, 2 * hidden, hidden, n_class), _LANE)   # lane-dense feat dim
    np_ = _round_up(n_nodes, _LANE)                                   # padded node dim

    # Densified graph structure: A[dst, src]=1 per edge so "add" aggregation is
    # A @ h;  P[g, n]=1 iff node n is in graph g so global_add_pool is P @ h.
    # Padded nodes have zero A columns and zero P columns, so they never
    # contribute to real rows or to the pooled sums.
    src, dst = edge_index[0], edge_index[1]
    adj = (jnp.zeros((np_, np_), jnp.float32)
           .at[dst, src].add(1.0)).astype(jnp.bfloat16)
    pool = (batch[None, :] == jnp.arange(num_graphs, dtype=batch.dtype)[:, None])
    pool = _pad2(pool.astype(jnp.bfloat16), num_graphs, np_)

    # Fold BN into the linears, pad to lane-dense (dp, dp), stack across layers.
    eps = jnp.stack([l["eps"].astype(jnp.float32) for l in layers])
    w1s, c1s, w2s, c2s = [], [], [], []
    for l in layers:
        w1, c1 = _fold_linear_bn(l["w1"], l["b1"], l["bn_mlp"], dp)
        w2, c2 = _fold_linear_bn(l["w2"], l["b2"], l["bn_out"], dp)
        w1s.append(w1); c1s.append(c1); w2s.append(w2); c2s.append(c2)
    w1s, c1s = jnp.stack(w1s), jnp.stack(c1s)
    w2s, c2s = jnp.stack(w2s), jnp.stack(c2s)
    wl1, cl1 = _fold_linear_bn(params["lin1"][0], params["lin1"][1],
                               params["bn1"], dp)
    wl2, bl2 = _pad_linear(params["lin2"][0], params["lin2"][1], dp)
    x_pad = _pad2(x.astype(jnp.float32), np_, dp)

    vmem = pl.BlockSpec(memory_space=pltpu.MemorySpace.VMEM)
    smem = pl.BlockSpec(memory_space=pltpu.MemorySpace.SMEM)
    out = pl.pallas_call(
        functools.partial(_gin_fused_kernel, num_layers=num_layers),
        out_shape=jax.ShapeDtypeStruct((num_graphs, dp), jnp.float32),
        in_specs=[smem] + [vmem] * 11,
        out_specs=vmem,
        compiler_params=pltpu.CompilerParams(vmem_limit_bytes=32 * 1024 * 1024),
    )(eps, x_pad, adj, pool, w1s, c1s, w2s, c2s, wl1, cl1, wl2, bl2)
    return out[:, :n_class]


def gin_model_forward(params, s_data, q_data, s_label):
    """Equivalent of GINModel.forward(s_data, q_data, s_label)."""
    s_x, s_edge_index, s_batch, s_num_graphs = s_data
    q_x, q_edge_index, q_batch, q_num_graphs = q_data
    s_logits = gin_forward(params, s_x, s_edge_index, s_batch,
                           num_graphs=s_num_graphs)
    q_logits = gin_forward(params, q_x, q_edge_index, q_batch,
                           num_graphs=q_num_graphs)
    node_emb = s_x
    adj = s_edge_index            # matches PyTorch: adj = s_data.edge_index
    return s_logits, q_logits, adj, node_emb


# --------------------------- pure-JAX reference ------------------------------ #

def _gin_forward_ref(params, x, edge_index, batch, num_graphs):
    n = x.shape[0]
    src, dst = edge_index[0], edge_index[1]
    adj = jnp.zeros((n, n), jnp.float32).at[dst, src].add(1.0)
    pool = (batch[None, :] == jnp.arange(num_graphs, dtype=batch.dtype)[:, None]
            ).astype(jnp.float32)

    def bn(v, p):
        gamma, beta, mean, var = p
        return (v - mean) * gamma * jax.lax.rsqrt(var + _BN_EPS) + beta

    h = x
    for l in params["layers"]:
        t = (1.0 + l["eps"]) * h + adj @ h
        z = jax.nn.relu(bn(t @ l["w1"] + l["b1"], l["bn_mlp"]))
        h = jax.nn.relu(bn(z @ l["w2"] + l["b2"], l["bn_out"]))
    g = pool @ h
    t = jax.nn.relu(bn(g @ params["lin1"][0] + params["lin1"][1], params["bn1"]))
    return t @ params["lin2"][0] + params["lin2"][1]


# ------------------------------ example inputs ------------------------------ #

def make_graph_batch(key, num_graphs, nodes_per_graph, feat_dim):
    n_nodes = num_graphs * nodes_per_graph
    x = jax.random.normal(key, (n_nodes, feat_dim), jnp.float32)
    edges = []
    for g in range(num_graphs):
        off = g * nodes_per_graph
        for i in range(nodes_per_graph):   # undirected ring graph per component
            j = (i + 1) % nodes_per_graph
            edges.append((off + i, off + j))
            edges.append((off + j, off + i))
    edge_index = jnp.asarray(edges, dtype=jnp.int32).T          # (2, E)
    batch = jnp.repeat(jnp.arange(num_graphs, dtype=jnp.int32), nodes_per_graph)
    return x, edge_index, batch, num_graphs


if __name__ == "__main__":
    key = jax.random.PRNGKey(0)
    k_params, k_s, k_q = jax.random.split(key, 3)

    input_emb_dim, gin_hidden_dim, n_class, num_layers = 8, 32, 4, 2
    params = init_gin_params(k_params, input_emb_dim, gin_hidden_dim,
                             n_class, num_layers)

    s_data = make_graph_batch(k_s, num_graphs=2, nodes_per_graph=8,
                              feat_dim=input_emb_dim)    # 16 nodes
    q_data = make_graph_batch(k_q, num_graphs=3, nodes_per_graph=8,
                              feat_dim=input_emb_dim)    # 24 nodes
    s_label = jnp.array([0, 1], dtype=jnp.int32)

    s_logits, q_logits, adj, node_emb = gin_model_forward(
        params, s_data, q_data, s_label)
    jax.block_until_ready((s_logits, q_logits, adj, node_emb))

    assert s_logits.shape == (2, n_class)
    assert q_logits.shape == (3, n_class)
    assert node_emb.shape == s_data[0].shape
    assert bool(jnp.all(jnp.isfinite(s_logits))) and bool(jnp.all(jnp.isfinite(q_logits)))

    # Numerical check vs. pure-JAX f32 reference (loose tolerance: bf16 MXU path).
    s_ref = _gin_forward_ref(params, *s_data)
    q_ref = _gin_forward_ref(params, *q_data)
    assert jnp.allclose(s_logits, s_ref, atol=0.15, rtol=0.1), (s_logits, s_ref)
    assert jnp.allclose(q_logits, q_ref, atol=0.15, rtol=0.1), (q_logits, q_ref)

    print("KERNEL_OK")
</pallas_src>

<mosaic_0001>
module attributes {stable_mosaic.version = 11 : i64} {
  func.func private @main(%arg0: i32) attributes {dimension_semantics = [#tpu.dimension_semantics<core_parallel>], iteration_bounds = array<i64: 2>, tpu.core_type = #tpu.core_type<sc_scalar_subcore>, window_params = []} {
    return
  }
}

module attributes {stable_mosaic.version = 11 : i64} {
  func.func private @main(%arg0: i32) attributes {dimension_semantics = [#tpu.dimension_semantics<core_parallel>], iteration_bounds = array<i64: 2>, tpu.core_type = #tpu.core_type<sc_scalar_subcore>, window_params = []} {
    return
  }
}

module attributes {stable_mosaic.version = 11 : i64} {
  func.func @_gin_fused_kernel(%arg0: memref<2xf32, #tpu.memory_space<smem>>, %arg1: memref<128x128xf32, #tpu.memory_space<vmem>>, %arg2: memref<128x128xbf16, #tpu.memory_space<vmem>>, %arg3: memref<2x128xbf16, #tpu.memory_space<vmem>>, %arg4: memref<2x128x128xbf16, #tpu.memory_space<vmem>>, %arg5: memref<2x1x128xf32, #tpu.memory_space<vmem>>, %arg6: memref<2x128x128xbf16, #tpu.memory_space<vmem>>, %arg7: memref<2x1x128xf32, #tpu.memory_space<vmem>>, %arg8: memref<128x128xbf16, #tpu.memory_space<vmem>>, %arg9: memref<1x128xf32, #tpu.memory_space<vmem>>, %arg10: memref<128x128xbf16, #tpu.memory_space<vmem>>, %arg11: memref<1x128xf32, #tpu.memory_space<vmem>>, %arg12: memref<2x128xf32, #tpu.memory_space<vmem>>) attributes {dimension_semantics = [], scalar_prefetch = 0 : i64, scratch_operands = 0 : i64, tpu.core_type = #tpu.core_type<tc>} {
    %c0 = arith.constant 0 : index
    %c0_0 = arith.constant 0 : index
    %0 = vector.load %arg2[%c0, %c0_0] : memref<128x128xbf16, #tpu.memory_space<vmem>>, vector<128x128xbf16>
    %c0_1 = arith.constant 0 : index
    %c0_2 = arith.constant 0 : index
    %1 = vector.load %arg1[%c0_1, %c0_2] : memref<128x128xf32, #tpu.memory_space<vmem>>, vector<128x128xf32>
    %2 = arith.truncf %1 : vector<128x128xf32> to vector<128x128xbf16>
    %cst = arith.constant dense<0.000000e+00> : vector<128x128xf32>
    %3 = tpu.matmul %0, %2, %cst {dimension_numbers = #tpu.dot_dimension_numbers<[1], [0], [0], [1], [0, 0, 1, 1], [], []>} : vector<128x128xbf16>, vector<128x128xbf16>, vector<128x128xf32> -> vector<128x128xf32>
    %c0_3 = arith.constant 0 : index
    %4 = memref.load %arg0[%c0_3] : memref<2xf32, #tpu.memory_space<smem>>
    %cst_4 = arith.constant 1.000000e+00 : f32
    %5 = arith.addf %cst_4, %4 : f32
    %6 = vector.broadcast %5 : f32 to vector<128x128xf32>
    %7 = arith.mulf %6, %1 : vector<128x128xf32>
    %8 = arith.addf %7, %3 : vector<128x128xf32>
    %9 = arith.truncf %8 : vector<128x128xf32> to vector<128x128xbf16>
    %c0_5 = arith.constant 0 : index
    %c0_6 = arith.constant 0 : index
    %c0_7 = arith.constant 0 : index
    %10 = vector.load %arg4[%c0_5, %c0_6, %c0_7] : memref<2x128x128xbf16, #tpu.memory_space<vmem>>, vector<1x128x128xbf16>
    %11 = vector.shape_cast %10 : vector<1x128x128xbf16> to vector<128x128xbf16>
    %cst_8 = arith.constant dense<0.000000e+00> : vector<128x128xf32>
    %12 = tpu.matmul %9, %11, %cst_8 {dimension_numbers = #tpu.dot_dimension_numbers<[1], [0], [0], [1], [0, 0, 1, 1], [], []>} : vector<128x128xbf16>, vector<128x128xbf16>, vector<128x128xf32> -> vector<128x128xf32>
    %c0_9 = arith.constant 0 : index
    %c0_10 = arith.constant 0 : index
    %c0_11 = arith.constant 0 : index
    %13 = vector.load %arg5[%c0_9, %c0_10, %c0_11] : memref<2x1x128xf32, #tpu.memory_space<vmem>>, vector<1x1x128xf32>
    %14 = vector.shape_cast %13 : vector<1x1x128xf32> to vector<1x128xf32>
    %15 = vector.broadcast %14 : vector<1x128xf32> to vector<128x128xf32>
    %16 = arith.addf %12, %15 : vector<128x128xf32>
    %cst_12 = arith.constant 0.000000e+00 : f32
    %17 = vector.broadcast %cst_12 : f32 to vector<128x128xf32>
    %18 = arith.maximumf %16, %17 : vector<128x128xf32>
    %19 = arith.truncf %18 : vector<128x128xf32> to vector<128x128xbf16>
    %c0_13 = arith.constant 0 : index
    %c0_14 = arith.constant 0 : index
    %c0_15 = arith.constant 0 : index
    %20 = vector.load %arg6[%c0_13, %c0_14, %c0_15] : memref<2x128x128xbf16, #tpu.memory_space<vmem>>, vector<1x128x128xbf16>
    %21 = vector.shape_cast %20 : vector<1x128x128xbf16> to vector<128x128xbf16>
    %cst_16 = arith.constant dense<0.000000e+00> : vector<128x128xf32>
    %22 = tpu.matmul %19, %21, %cst_16 {dimension_numbers = #tpu.dot_dimension_numbers<[1], [0], [0], [1], [0, 0, 1, 1], [], []>} : vector<128x128xbf16>, vector<128x128xbf16>, vector<128x128xf32> -> vector<128x128xf32>
    %c0_17 = arith.constant 0 : index
    %c0_18 = arith.constant 0 : index
    %c0_19 = arith.constant 0 : index
    %23 = vector.load %arg7[%c0_17, %c0_18, %c0_19] : memref<2x1x128xf32, #tpu.memory_space<vmem>>, vector<1x1x128xf32>
    %24 = vector.shape_cast %23 : vector<1x1x128xf32> to vector<1x128xf32>
    %25 = vector.broadcast %24 : vector<1x128xf32> to vector<128x128xf32>
    %26 = arith.addf %22, %25 : vector<128x128xf32>
    %cst_20 = arith.constant 0.000000e+00 : f32
    %27 = vector.broadcast %cst_20 : f32 to vector<128x128xf32>
    %28 = arith.maximumf %26, %27 : vector<128x128xf32>
    %29 = arith.truncf %28 : vector<128x128xf32> to vector<128x128xbf16>
    %cst_21 = arith.constant dense<0.000000e+00> : vector<128x128xf32>
    %30 = tpu.matmul %0, %29, %cst_21 {dimension_numbers = #tpu.dot_dimension_numbers<[1], [0], [0], [1], [0, 0, 1, 1], [], []>} : vector<128x128xbf16>, vector<128x128xbf16>, vector<128x128xf32> -> vector<128x128xf32>
    %c1 = arith.constant 1 : index
    %31 = memref.load %arg0[%c1] : memref<2xf32, #tpu.memory_space<smem>>
    %cst_22 = arith.constant 1.000000e+00 : f32
    %32 = arith.addf %cst_22, %31 : f32
    %33 = vector.broadcast %32 : f32 to vector<128x128xf32>
    %34 = arith.mulf %33, %28 : vector<128x128xf32>
    %35 = arith.addf %34, %30 : vector<128x128xf32>
    %36 = arith.truncf %35 : vector<128x128xf32> to vector<128x128xbf16>
    %c1_23 = arith.constant 1 : index
    %c0_24 = arith.constant 0 : index
    %c0_25 = arith.constant 0 : index
    %37 = vector.load %arg4[%c1_23, %c0_24, %c0_25] : memref<2x128x128xbf16, #tpu.memory_space<vmem>>, vector<1x128x128xbf16>
    %38 = vector.shape_cast %37 : vector<1x128x128xbf16> to vector<128x128xbf16>
    %cst_26 = arith.constant dense<0.000000e+00> : vector<128x128xf32>
    %39 = tpu.matmul %36, %38, %cst_26 {dimension_numbers = #tpu.dot_dimension_numbers<[1], [0], [0], [1], [0, 0, 1, 1], [], []>} : vector<128x128xbf16>, vector<128x128xbf16>, vector<128x128xf32> -> vector<128x128xf32>
    %c1_27 = arith.constant 1 : index
    %c0_28 = arith.constant 0 : index
    %c0_29 = arith.constant 0 : index
    %40 = vector.load %arg5[%c1_27, %c0_28, %c0_29] : memref<2x1x128xf32, #tpu.memory_space<vmem>>, vector<1x1x128xf32>
    %41 = vector.shape_cast %40 : vector<1x1x128xf32> to vector<1x128xf32>
    %42 = vector.broadcast %41 : vector<1x128xf32> to vector<128x128xf32>
    %43 = arith.addf %39, %42 : vector<128x128xf32>
    %cst_30 = arith.constant 0.000000e+00 : f32
    %44 = vector.broadcast %cst_30 : f32 to vector<128x128xf32>
    %45 = arith.maximumf %43, %44 : vector<128x128xf32>
    %46 = arith.truncf %45 : vector<128x128xf32> to vector<128x128xbf16>
    %c1_31 = arith.constant 1 : index
    %c0_32 = arith.constant 0 : index
    %c0_33 = arith.constant 0 : index
    %47 = vector.load %arg6[%c1_31, %c0_32, %c0_33] : memref<2x128x128xbf16, #tpu.memory_space<vmem>>, vector<1x128x128xbf16>
    %48 = vector.shape_cast %47 : vector<1x128x128xbf16> to vector<128x128xbf16>
    %cst_34 = arith.constant dense<0.000000e+00> : vector<128x128xf32>
    %49 = tpu.matmul %46, %48, %cst_34 {dimension_numbers = #tpu.dot_dimension_numbers<[1], [0], [0], [1], [0, 0, 1, 1], [], []>} : vector<128x128xbf16>, vector<128x128xbf16>, vector<128x128xf32> -> vector<128x128xf32>
    %c1_35 = arith.constant 1 : index
    %c0_36 = arith.constant 0 : index
    %c0_37 = arith.constant 0 : index
    %50 = vector.load %arg7[%c1_35, %c0_36, %c0_37] : memref<2x1x128xf32, #tpu.memory_space<vmem>>, vector<1x1x128xf32>
    %51 = vector.shape_cast %50 : vector<1x1x128xf32> to vector<1x128xf32>
    %52 = vector.broadcast %51 : vector<1x128xf32> to vector<128x128xf32>
    %53 = arith.addf %49, %52 : vector<128x128xf32>
    %cst_38 = arith.constant 0.000000e+00 : f32
    %54 = vector.broadcast %cst_38 : f32 to vector<128x128xf32>
    %55 = arith.maximumf %53, %54 : vector<128x128xf32>
    %c0_39 = arith.constant 0 : index
    %c0_40 = arith.constant 0 : index
    %56 = vector.load %arg3[%c0_39, %c0_40] : memref<2x128xbf16, #tpu.memory_space<vmem>>, vector<2x128xbf16>
    %57 = arith.truncf %55 : vector<128x128xf32> to vector<128x128xbf16>
    %cst_41 = arith.constant dense<0.000000e+00> : vector<2x128xf32>
    %58 = tpu.matmul %56, %57, %cst_41 {dimension_numbers = #tpu.dot_dimension_numbers<[1], [0], [0], [1], [0, 0, 1, 1], [], []>} : vector<2x128xbf16>, vector<128x128xbf16>, vector<2x128xf32> -> vector<2x128xf32>
    %59 = arith.truncf %58 : vector<2x128xf32> to vector<2x128xbf16>
    %c0_42 = arith.constant 0 : index
    %c0_43 = arith.constant 0 : index
    %60 = vector.load %arg8[%c0_42, %c0_43] : memref<128x128xbf16, #tpu.memory_space<vmem>>, vector<128x128xbf16>
    %cst_44 = arith.constant dense<0.000000e+00> : vector<2x128xf32>
    %61 = tpu.matmul %59, %60, %cst_44 {dimension_numbers = #tpu.dot_dimension_numbers<[1], [0], [0], [1], [0, 0, 1, 1], [], []>} : vector<2x128xbf16>, vector<128x128xbf16>, vector<2x128xf32> -> vector<2x128xf32>
    %c0_45 = arith.constant 0 : index
    %c0_46 = arith.constant 0 : index
    %62 = vector.load %arg9[%c0_45, %c0_46] : memref<1x128xf32, #tpu.memory_space<vmem>>, vector<1x128xf32>
    %63 = vector.broadcast %62 : vector<1x128xf32> to vector<2x128xf32>
    %64 = arith.addf %61, %63 : vector<2x128xf32>
    %cst_47 = arith.constant 0.000000e+00 : f32
    %65 = vector.broadcast %cst_47 : f32 to vector<2x128xf32>
    %66 = arith.maximumf %64, %65 : vector<2x128xf32>
    %67 = arith.truncf %66 : vector<2x128xf32> to vector<2x128xbf16>
    %c0_48 = arith.constant 0 : index
    %c0_49 = arith.constant 0 : index
    %68 = vector.load %arg10[%c0_48, %c0_49] : memref<128x128xbf16, #tpu.memory_space<vmem>>, vector<128x128xbf16>
    %cst_50 = arith.constant dense<0.000000e+00> : vector<2x128xf32>
    %69 = tpu.matmul %67, %68, %cst_50 {dimension_numbers = #tpu.dot_dimension_numbers<[1], [0], [0], [1], [0, 0, 1, 1], [], []>} : vector<2x128xbf16>, vector<128x128xbf16>, vector<2x128xf32> -> vector<2x128xf32>
    %c0_51 = arith.constant 0 : index
    %c0_52 = arith.constant 0 : index
    %70 = vector.load %arg11[%c0_51, %c0_52] : memref<1x128xf32, #tpu.memory_space<vmem>>, vector<1x128xf32>
    %71 = vector.broadcast %70 : vector<1x128xf32> to vector<2x128xf32>
    %72 = arith.addf %69, %71 : vector<2x128xf32>
    %c0_53 = arith.constant 0 : index
    %c0_54 = arith.constant 0 : index
    %73 = vector.load %arg12[%c0_53, %c0_54] : memref<2x128xf32, #tpu.memory_space<vmem>>, vector<2x128xf32>
    tpu.vector_store %arg12[%c0_53, %c0_54], %72 {strides = array<i32>} : memref<2x128xf32, #tpu.memory_space<vmem>>, vector<2x128xf32>,
    return
  }
}

</mosaic_0001>

<bundles_post_ra>
// kernel: gin_forward.1
= control target key start
LH: loop header
LB: loop body
LE: loop exit
PB: predicated region body
PF: predicated region fallthrough
CT: control target
= control target key end

     0   :  { %17 = vsyncpa [#allocation4], 0  ;;  %s2607_s0 = inlined_call_operand.vmem [shape: f32[2], index: 0, kind: input, shape index: {}]   ;;  %s2608_s1 = inlined_call_operand.vmem [shape: f32[128,128], index: 1, kind: input, shape index: {}]   ;;  %s2609_s2 = inlined_call_operand.vmem [shape: bf16[128,128], index: 2, kind: input, shape index: {}]   ;;  %s2610_s3 = inlined_call_operand.vmem [shape: bf16[2,128], index: 3, kind: input, shape index: {}]   ;;  %s2611_s4 = inlined_call_operand.vmem [shape: bf16[2,128,128], index: 4, kind: input, shape index: {}]   ;;  %s2612_s5 = inlined_call_operand.vmem [shape: f32[2,1,128], index: 5, kind: input, shape index: {}]   ;;  %s2613_s6 = inlined_call_operand.vmem [shape: bf16[2,128,128], index: 6, kind: input, shape index: {}]   ;;  %s2614_s7 = inlined_call_operand.vmem [shape: f32[2,1,128], index: 7, kind: input, shape index: {}]   ;;  %s2615_s8 = inlined_call_operand.vmem [shape: bf16[128,128], index: 8, kind: input, shape index: {}]   ;;  %s2616_s9 = inlined_call_operand.vmem [shape: f32[1,128], index: 9, kind: input, shape index: {}]   ;;  %s2617_s10 = inlined_call_operand.vmem [shape: bf16[128,128], index: 10, kind: input, shape index: {}]   ;;  %s2618_s11 = inlined_call_operand.vmem [shape: f32[1,128], index: 11, kind: input, shape index: {}]   ;;  %s2619_s12 = inlined_call_operand.hbm [shape: f32[2,128], index: 12, kind: output, shape index: {}]  }
   0x1   :  { %18 = vsyncpa [#allocation3], 0  ;;  %s25_s23 = sshll.u32 %s2607_s0, 4  ;;  %s26_s23 = int_to_ptr.vmem [resolvable:$true] %s25_s23 }
   0x2   :  { %s2010_s24 = scalar_lea.vmem %s26_s23, 16  ;;  %p2015_p1 = scmp.lt.s32.totalorder %s26_s23, %s26_s23 }
   0x3   :  { %p2011_p0 = scmp.ne.s32.totalorder %s26_s23, %s2010_s24  ;;  %p2016_p2 = scmp.lt.s32.totalorder %s2010_s24, %s2010_s24 }
   0x5   :  { %p2017_p3 = por %p2016_p2, %p2015_p1 }
   0x7   :  { %p2018_p4 = pnand %p2017_p3, %p2011_p0 }
   0x9   :  { %2021 = shalt.err (!%p2018_p4)
}
   0xa   :  { %s2048_s25 = smov [#allocation2]  }
   0xb   :  { %28 = dma.vmem_to_smem %s26_s23, 16, %s2048_s25, [#allocation4]  }
   0xc   :  { %2044 = dma.done.wait [#allocation4], 16  }
   0xd   :  { %2045 = vsyncadd [#allocation4], 4294967280 }
   0xe   :  { %54 = sfence }
   0xf   :  { %v2123_v0 = vld [vmem:[%s2608_s1] sm:$0xff]  ;;  %v2128_v1 = vld [vmem:[%s2608_s1 + $0x8] sm:$0xff]  ;;  %v2133_v2 = vld [vmem:[%s2608_s1 + $0x10] sm:$0xff]  ;;  %s241_s23 = sld [smem:[#allocation2]]  ;;  %s1504_s18 = sld [smem:[#allocation2 + $0x1]]  ;;  %vm2050_vm0 = vmmov 0  }
  0x10   :  { %v88_v3 = vpack.c.bf16 %v2128_v1, %v2123_v0  ;;  %v2140_v4 = vld [vmem:[%s2608_s1 + $0x18] sm:$0xff]  ;;  %v2147_v6 = vld [vmem:[%s2608_s1 + $0x20] sm:$0xff]  ;;  %v2152_v7 = vld [vmem:[%s2608_s1 + $0x28] sm:$0xff]  ;;  %s2051_s15 = smov [#allocation5]  }
  0x11   :  { %v89_v5 = vpack.c.bf16 %v2140_v4, %v2133_v2  ;;  %v2157_v8 = vld [vmem:[%s2608_s1 + $0x30] sm:$0xff]  ;;  %v90_v9 = vpack.c.bf16 %v2152_v7, %v2147_v6  ;;  %v2164_v10 = vld [vmem:[%s2608_s1 + $0x38] sm:$0xff]  ;;  %v2169_v11 = vld [vmem:[%s2609_s2] sm:$0xff]   ;;  %s1469_s16 = sshll.u32 %s2051_s15, 4  ;;  %s1470_s16 = int_to_ptr.vmem [resolvable:$true] %s1469_s16 }
  0x12   :  { %1698 = vmatprep.subr.bf16.mxu0 %v88_v3  ;;  %1714 = vmatprep.mubr.bf16.mxu0 %v2169_v11  ;;  %v91_v12 = vpack.c.bf16 %v2164_v10, %v2157_v8  ;;  %v2177_v13 = vld [vmem:[%s2608_s1 + $0x40] sm:$0xff]  ;;  %v2182_v14 = vld [vmem:[%s2608_s1 + $0x48] sm:$0xff]  ;;  %v2187_v15 = vld [vmem:[%s2608_s1 + $0x50] sm:$0xff]  ;;  %p2027_p6 = scmp.lt.s32.totalorder %s1470_s16, %s1470_s16 }
  0x13   :  { %1699 = vmatpush3.bf16.msra.mxu0 %v88_v3  ;;  %v92_v16 = vpack.c.bf16 %v2182_v14, %v2177_v13  ;;  %v2194_v17 = vld [vmem:[%s2608_s1 + $0x58] sm:$0xff]  ;;  %v1962_v18 = vld [vmem:[%s2611_s4] sm:$0xff]   ;;  %v1963_v19 = vld [vmem:[%s2611_s4 + $0x8] sm:$0xff]  }
  0x14   :  { %1700 = vmatprep.subr.bf16.mxu0 %v89_v5  ;;  %v2205_v20 = vld [vmem:[%s2608_s1 + $0x60] sm:$0xff]  ;;  %1730 = vmatprep.subr.bf16.mxu1 %v1962_v18  ;;  %v93_v21 = vpack.c.bf16 %v2194_v17, %v2187_v15  ;;  %v2212_v22 = vld [vmem:[%s2608_s1 + $0x68] sm:$0xff]  ;;  %v1964_v23 = vld [vmem:[%s2611_s4 + $0x10] sm:$0xff]  }
  0x15   :  { %1731 = vmatpush3.bf16.msra.mxu1 %v1962_v18  ;;  %v2220_v24 = vld [vmem:[%s2608_s1 + $0x70] sm:$0xff]  ;;  %v2225_v25 = vld [vmem:[%s2608_s1 + $0x78] sm:$0xff]  ;;  %v94_v27 = vpack.c.bf16 %v2212_v22, %v2205_v20  ;;  %v1966_v28 = vld [vmem:[%s2611_s4 + $0x20] sm:$0xff]   ;;  %s242_s24 = sadd.f32 1.0, %s241_s23 }
  0x16   :  { %1732 = vmatprep.subr.bf16.mxu1 %v1963_v19  ;;  %v1965_v26 = vld [vmem:[%s2611_s4 + $0x18] sm:$0xff]   ;;  %v95_v29 = vpack.c.bf16 %v2225_v25, %v2220_v24  ;;  %v1967_v30 = vld [vmem:[%s2611_s4 + $0x28] sm:$0xff]   ;;  %v2248_v32 = vld [vmem:[%s2609_s2 + $0x10] sm:$0xff]   ;;  %s766_s19 = sadd.f32 1.0, %s1504_s18 }
  0x17   :  { %1701 = vmatpush3.bf16.msra.mxu0 %v89_v5  ;;  %v2243_v31 = vld [vmem:[%s2609_s2 + $0x8] sm:$0xff]   ;;  %v2255_v33 = vld [vmem:[%s2609_s2 + $0x18] sm:$0xff]   ;;  %v2260_v34 = vld [vmem:[%s2609_s2 + $0x20] sm:$0xff]   ;;  %v243_v46 = vstv %s242_s24 }
  0x18   :  { %1702 = vmatprep.subr.bf16.mxu0 %v90_v9  ;;  %v2267_v35 = vld [vmem:[%s2609_s2 + $0x28] sm:$0xff]   ;;  %v2272_v36 = vld [vmem:[%s2609_s2 + $0x30] sm:$0xff]   ;;  %v2279_v37 = vld [vmem:[%s2609_s2 + $0x38] sm:$0xff]   ;;  %v246_v47 = vmul.f32 %v243_v46, %v2133_v2  ;;  %v247_v48 = vmul.f32 %v243_v46, %v2140_v4  ;;  %v244_v50 = vmul.f32 %v243_v46, %v2123_v0  ;;  %v245_v51 = vmul.f32 %v243_v46, %v2128_v1 }
  0x19   :  { %1733 = vmatpush3.bf16.msra.mxu1 %v1963_v19  ;;  %v1968_v38 = vld [vmem:[%s2611_s4 + $0x30] sm:$0xff]   ;;  %v1969_v39 = vld [vmem:[%s2611_s4 + $0x38] sm:$0xff]   ;;  %v1970_v40 = vld [vmem:[%s2613_s6] sm:$0xff]   ;;  %v250_v61 = vmul.f32 %v243_v46, %v2157_v8  ;;  %v251_v62 = vmul.f32 %v243_v46, %v2164_v10  ;;  %v248_v2 = vmul.f32 %v243_v46, %v2147_v6  ;;  %v249_v0 = vmul.f32 %v243_v46, %v2152_v7 }
  0x1a   :  { %1734 = vmatprep.subr.bf16.mxu1 %v1964_v23  ;;  %v1971_v41 = vld [vmem:[%s2613_s6 + $0x8] sm:$0xff]   ;;  %v1972_v42 = vld [vmem:[%s2613_s6 + $0x10] sm:$0xff]   ;;  %v1973_v43 = vld [vmem:[%s2613_s6 + $0x18] sm:$0xff]   ;;  %v254_v8 = vmul.f32 %v243_v46, %v2187_v15  ;;  %v255_v10 = vmul.f32 %v243_v46, %v2194_v17  ;;  %v252_v6 = vmul.f32 %v243_v46, %v2177_v13  ;;  %v253_v7 = vmul.f32 %v243_v46, %v2182_v14 }
  0x1b   :  { %1703 = vmatpush3.bf16.msra.mxu0 %v90_v9  ;;  %v1974_v44 = vld [vmem:[%s2613_s6 + $0x20] sm:$0xff]   ;;  %v1975_v45 = vld [vmem:[%s2613_s6 + $0x28] sm:$0xff]   ;;  %v258_v15 = vmul.f32 %v243_v46, %v2220_v24  ;;  %v259_v17 = vmul.f32 %v243_v46, %v2225_v25  ;;  %v256_v13 = vmul.f32 %v243_v46, %v2205_v20  ;;  %v257_v14 = vmul.f32 %v243_v46, %v2212_v22  ;;  %v1976_v20 = vld [vmem:[%s2613_s6 + $0x30] sm:$0xff]  }
  0x1c   :  { %1704 = vmatprep.subr.bf16.mxu0 %v91_v12  ;;  %v1977_v22 = vld [vmem:[%s2613_s6 + $0x38] sm:$0xff]   ;;  %v1486_v24 = vld [vmem:[%s2612_s5] ss:$0 sm:$0xff] }
  0x1d   :  { %1735 = vmatpush3.bf16.msra.mxu1 %v1964_v23 }
  0x1e   :  { %1736 = vmatprep.subr.bf16.mxu1 %v1965_v26 }
  0x1f   :  { %1705 = vmatpush3.bf16.msra.mxu0 %v91_v12 }
  0x20   :  { %1706 = vmatprep.subr.bf16.mxu0 %v92_v16 }
  0x21   :  { %1737 = vmatpush3.bf16.msra.mxu1 %v1965_v26 }
  0x22   :  { %1738 = vmatprep.subr.bf16.mxu1 %v1966_v28 }
  0x23   :  { %1707 = vmatpush3.bf16.msra.mxu0 %v92_v16 }
  0x24   :  { %1708 = vmatprep.subr.bf16.mxu0 %v93_v21 }
  0x25   :  { %1739 = vmatpush3.bf16.msra.mxu1 %v1966_v28 }
  0x26   :  { %1740 = vmatprep.subr.bf16.mxu1 %v1967_v30 }
  0x27   :  { %1709 = vmatpush3.bf16.msra.mxu0 %v93_v21 }
  0x28   :  { %1710 = vmatprep.subr.bf16.mxu0 %v94_v27 }
  0x29   :  { %1741 = vmatpush3.bf16.msra.mxu1 %v1967_v30 }
  0x2a   :  { %1742 = vmatprep.subr.bf16.mxu1 %v1968_v38 }
  0x2b   :  { %1711 = vmatpush3.bf16.msra.mxu0 %v94_v27 }
  0x2c   :  { %1712 = vmatprep.subr.bf16.mxu0 %v95_v29 }
  0x2d   :  { %1743 = vmatpush3.bf16.msra.mxu1 %v1968_v38 }
  0x2e   :  { %1744 = vmatprep.subr.bf16.mxu1 %v1969_v39 }
  0x2f   :  { %1713 = vmatpush3.bf16.msra.mxu0 %v95_v29 }
  0x30   :  { %1762 = vmatprep.subr.bf16.mxu0 %v1970_v40 }
  0x31   :  { %1745 = vmatpush3.bf16.msra.mxu1 %v1969_v39 }
  0x32   :  { %1715 = vmatmul.mubr.bf16.vlgmr.msra.gmra.mrb[0].mxu0 %v2243_v31 }
  0x33   :  { %1718 = vmatprep.mubr.bf16.mxu0 %v2248_v32  ;;  %1763 = vmatpush3.bf16.msra.mxu0 %v1970_v40 }
  0x34   :  { %1764 = vmatprep.subr.bf16.mxu0 %v1971_v41 }
  0x37   :  { %1765 = vmatpush3.bf16.msra.mxu0 %v1971_v41 }
  0x38   :  { %1766 = vmatprep.subr.bf16.mxu0 %v1972_v42 }
  0x3a   :  { %1719 = vmatmul.mubr.bf16.gmra.mrb[4].mxu0 %v2255_v33 }
  0x3b   :  { %1722 = vmatprep.mubr.bf16.mxu0 %v2260_v34  ;;  %1767 = vmatpush3.bf16.msra.mxu0 %v1972_v42 }
  0x3c   :  { %1768 = vmatprep.subr.bf16.mxu0 %v1973_v43 }
  0x3f   :  { %1769 = vmatpush3.bf16.msra.mxu0 %v1973_v43 }
  0x40   :  { %1770 = vmatprep.subr.bf16.mxu0 %v1974_v44 }
  0x42   :  { %1723 = vmatmul.mubr.bf16.gmra.mrb[8].mxu0 %v2267_v35 }
  0x43   :  { %1726 = vmatprep.mubr.bf16.mxu0 %v2272_v36  ;;  %1771 = vmatpush3.bf16.msra.mxu0 %v1974_v44 }
  0x44   :  { %1772 = vmatprep.subr.bf16.mxu0 %v1975_v45 }
  0x47   :  { %1773 = vmatpush3.bf16.msra.mxu0 %v1975_v45 }
  0x48   :  { %1774 = vmatprep.subr.bf16.mxu0 %v1976_v20 }
  0x4a   :  { %1727 = vmatmul.mubr.bf16.gmra.mrb[12].mxu0 %v2279_v37 }
  0x4b   :  { %1775 = vmatpush3.bf16.msra.mxu0 %v1976_v20 }
  0x4c   :  { %1776 = vmatprep.subr.bf16.mxu0 %v1977_v22 }
  0x4f   :  { %1777 = vmatpush3.bf16.msra.mxu0 %v1977_v22 }
 0x105   :  { %v1716_v49 = vpop.f32.mrb[0].mxu0 }
 0x106   :  { %v178_v52 = vpop.f32.mrb[1].mxu0  ;;  %v262_v54 = vadd.f32 %v1716_v49, %v246_v47 }
 0x107   :  { %v1717_v53 = vpop.f32.mrb[2].mxu0  ;;  %v260_v57 = vadd.f32 %v244_v50, %v178_v52 }
 0x108   :  { %v263_v55 = vadd.f32 %v1717_v53, %v247_v48  ;;  %v181_v56 = vpop.f32.mrb[3].mxu0 }
 0x109   :  { %v261_v58 = vadd.f32 %v245_v51, %v181_v56 }
 0x10a   :  { %v277_v59 = vpack.c.bf16 %v263_v55, %v262_v54 }
 0x10b   :  { %v276_v60 = vpack.c.bf16 %v261_v58, %v260_v57 }
 0x10d   :  { %v1720_v63 = vpop.f32.mrb[4].mxu0  ;;  %1746 = vmatprep.mubr.bf16.mxu1 %v276_v60 }
 0x10e   :  { %v194_v1 = vpop.f32.mrb[5].mxu0  ;;  %1747 = vmatmul.mubr.bf16.vlgmr.msra.gmra.mrb[0].mxu1 %v277_v59  ;;  %v266_v4 = vadd.f32 %v1720_v63, %v250_v61 }
 0x10f   :  { %v1721_v3 = vpop.f32.mrb[6].mxu0  ;;  %v264_v12 = vadd.f32 %v248_v2, %v194_v1 }
 0x110   :  { %v267_v5 = vadd.f32 %v1721_v3, %v251_v62  ;;  %v197_v9 = vpop.f32.mrb[7].mxu0 }
 0x111   :  { %v265_v16 = vadd.f32 %v249_v0, %v197_v9 }
 0x112   :  { %v279_v18 = vpack.c.bf16 %v267_v5, %v266_v4 }
 0x113   :  { %v278_v19 = vpack.c.bf16 %v265_v16, %v264_v12 }
 0x115   :  { %v1724_v21 = vpop.f32.mrb[8].mxu0  ;;  %1750 = vmatprep.mubr.bf16.mxu1 %v278_v19 }
 0x116   :  { %v210_v23 = vpop.f32.mrb[9].mxu0  ;;  %1751 = vmatmul.mubr.bf16.gmra.mrb[4].mxu1 %v279_v18  ;;  %v270_v27 = vadd.f32 %v1724_v21, %v254_v8 }
 0x117   :  { %v1725_v26 = vpop.f32.mrb[10].mxu0  ;;  %v268_v30 = vadd.f32 %v252_v6, %v210_v23 }
 0x118   :  { %v271_v28 = vadd.f32 %v1725_v26, %v255_v10  ;;  %v213_v29 = vpop.f32.mrb[11].mxu0 }
 0x119   :  { %v269_v38 = vadd.f32 %v253_v7, %v213_v29 }
 0x11a   :  { %v281_v39 = vpack.c.bf16 %v271_v28, %v270_v27 }
 0x11b   :  { %v280_v40 = vpack.c.bf16 %v269_v38, %v268_v30 }
 0x11d   :  { %v1728_v41 = vpop.f32.mrb[12].mxu0  ;;  %1754 = vmatprep.mubr.bf16.mxu1 %v280_v40 }
 0x11e   :  { %v226_v42 = vpop.f32.mrb[13].mxu0  ;;  %1755 = vmatmul.mubr.bf16.gmra.mrb[8].mxu1 %v281_v39  ;;  %v274_v44 = vadd.f32 %v1728_v41, %v258_v15 }
 0x11f   :  { %v1729_v43 = vpop.f32.mrb[14].mxu0  ;;  %v272_v48 = vadd.f32 %v256_v13, %v226_v42 }
 0x120   :  { %v275_v45 = vadd.f32 %v1729_v43, %v259_v17  ;;  %v229_v47 = vpop.f32.mrb[15].mxu0 }
 0x121   :  { %v273_v49 = vadd.f32 %v257_v14, %v229_v47 }
 0x122   :  { %v283_v50 = vpack.c.bf16 %v275_v45, %v274_v44 }
 0x123   :  { %v282_v51 = vpack.c.bf16 %v273_v49, %v272_v48 }
 0x125   :  { %1758 = vmatprep.mubr.bf16.mxu1 %v282_v51 }
 0x126   :  { %1759 = vmatmul.mubr.bf16.gmra.mrb[12].mxu1 %v283_v50 }
 0x127   :  { %1810 = vmatprep.mubr.bf16.mxu1 %v2169_v11 }
 0x1e1   :  { %v1748_v25 = vpop.f32.mrb[0].mxu1 }
 0x1e2   :  { %v398_v46 = vadd.f32 %v1748_v25, %v1486_v24  ;;  %v389_v52 = vpop.f32.mrb[1].mxu1  ;;  %v1978_v25 = vld [vmem:[%s2611_s4 + $0x40] sm:$0xff]  }
 0x1e3   :  { %v390_v11 = vadd.f32 %v1486_v24, %v389_v52  ;;  %v1749_v53 = vpop.f32.mrb[2].mxu1  ;;  %1826 = vmatprep.subr.bf16.mxu0 %v1978_v25  ;;  %v1981_v52 = vld [vmem:[%s2611_s4 + $0x58] sm:$0xff]  }
 0x1e4   :  { %v401_v54 = vadd.f32 %v1749_v53, %v1486_v24  ;;  %v392_v55 = vpop.f32.mrb[3].mxu1  ;;  %v454_v57 = vmax.f32 %v398_v46, 0.0  ;;  %v1979_v46 = vld [vmem:[%s2611_s4 + $0x48] sm:$0xff]  }
 0x1e5   :  { %v393_v56 = vadd.f32 %v1486_v24, %v392_v55  ;;  %v452_v59 = vmax.f32 %v390_v11, 0.0  ;;  %v1982_v11 = vld [vmem:[%s2611_s4 + $0x60] sm:$0xff]   ;;  %v1983_v53 = vld [vmem:[%s2611_s4 + $0x68] sm:$0xff]  }
 0x1e6   :  { %v455_v58 = vmax.f32 %v401_v54, 0.0  ;;  %v1495_v54 = vld [vmem:[%s2614_s7] ss:$0 sm:$0xff] }
 0x1e7   :  { %v453_v60 = vmax.f32 %v393_v56, 0.0 }
 0x1e8   :  { %v469_v61 = vpack.c.bf16 %v455_v58, %v454_v57 }
 0x1e9   :  { %v468_v62 = vpack.c.bf16 %v453_v60, %v452_v59  ;;  %v1752_v63 = vpop.f32.mrb[4].mxu1 }
 0x1ea   :  { %v414_v2 = vadd.f32 %v1752_v63, %v1486_v24  ;;  %v405_v0 = vpop.f32.mrb[5].mxu1 }
 0x1eb   :  { %v406_v1 = vadd.f32 %v1486_v24, %v405_v0  ;;  %v1753_v3 = vpop.f32.mrb[6].mxu1  ;;  %1778 = vmatprep.mubr.bf16.mxu0 %v468_v62 }
 0x1ec   :  { %v417_v4 = vadd.f32 %v1753_v3, %v1486_v24  ;;  %v408_v5 = vpop.f32.mrb[7].mxu1  ;;  %1779 = vmatmul.mubr.bf16.vlgmr.msra.gmra.mrb[16].mxu0 %v469_v61  ;;  %v458_v12 = vmax.f32 %v414_v2, 0.0 }
 0x1ed   :  { %v409_v9 = vadd.f32 %v1486_v24, %v408_v5  ;;  %v456_v18 = vmax.f32 %v406_v1, 0.0  ;;  %1827 = vmatpush3.bf16.msra.mxu0 %v1978_v25 }
 0x1ee   :  { %v459_v16 = vmax.f32 %v417_v4, 0.0  ;;  %1828 = vmatprep.subr.bf16.mxu0 %v1979_v46 }
 0x1ef   :  { %v457_v19 = vmax.f32 %v409_v9, 0.0 }
 0x1f0   :  { %v471_v8 = vpack.c.bf16 %v459_v16, %v458_v12 }
 0x1f1   :  { %v470_v10 = vpack.c.bf16 %v457_v19, %v456_v18  ;;  %v1756_v21 = vpop.f32.mrb[8].mxu1  ;;  %1829 = vmatpush3.bf16.msra.mxu0 %v1979_v46 }
 0x1f2   :  { %v430_v6 = vadd.f32 %v1756_v21, %v1486_v24  ;;  %v421_v7 = vpop.f32.mrb[9].mxu1 }
 0x1f3   :  { %v422_v23 = vadd.f32 %v1486_v24, %v421_v7  ;;  %v1757_v26 = vpop.f32.mrb[10].mxu1  ;;  %1782 = vmatprep.mubr.bf16.mxu0 %v470_v10 }
 0x1f4   :  { %v433_v27 = vadd.f32 %v1757_v26, %v1486_v24  ;;  %v424_v28 = vpop.f32.mrb[11].mxu1  ;;  %1783 = vmatmul.mubr.bf16.gmra.mrb[20].mxu0 %v471_v8  ;;  %v462_v30 = vmax.f32 %v430_v6, 0.0 }
 0x1f5   :  { %v425_v29 = vadd.f32 %v1486_v24, %v424_v28  ;;  %v460_v39 = vmax.f32 %v422_v23, 0.0 }
 0x1f6   :  { %v463_v38 = vmax.f32 %v433_v27, 0.0 }
 0x1f7   :  { %v461_v40 = vmax.f32 %v425_v29, 0.0 }
 0x1f8   :  { %v473_v15 = vpack.c.bf16 %v463_v38, %v462_v30 }
 0x1f9   :  { %v472_v17 = vpack.c.bf16 %v461_v40, %v460_v39  ;;  %v1760_v41 = vpop.f32.mrb[12].mxu1 }
 0x1fa   :  { %v446_v13 = vadd.f32 %v1760_v41, %v1486_v24  ;;  %v437_v14 = vpop.f32.mrb[13].mxu1 }
 0x1fb   :  { %v438_v42 = vadd.f32 %v1486_v24, %v437_v14  ;;  %v1761_v43 = vpop.f32.mrb[14].mxu1  ;;  %1786 = vmatprep.mubr.bf16.mxu0 %v472_v17 }
 0x1fc   :  { %v449_v44 = vadd.f32 %v1761_v43, %v1486_v24  ;;  %v440_v45 = vpop.f32.mrb[15].mxu1  ;;  %1787 = vmatmul.mubr.bf16.gmra.mrb[24].mxu0 %v473_v15  ;;  %v466_v48 = vmax.f32 %v446_v13, 0.0 }
 0x1fd   :  { %v441_v47 = vadd.f32 %v1486_v24, %v440_v45  ;;  %v464_v50 = vmax.f32 %v438_v42, 0.0  ;;  %v1980_v24 = vld [vmem:[%s2611_s4 + $0x50] sm:$0xff]  }
 0x1fe   :  { %v467_v49 = vmax.f32 %v449_v44, 0.0  ;;  %1830 = vmatprep.subr.bf16.mxu0 %v1980_v24 }
 0x1ff   :  { %v465_v51 = vmax.f32 %v441_v47, 0.0  ;;  %1831 = vmatpush3.bf16.msra.mxu0 %v1980_v24 }
 0x200   :  { %v475_v20 = vpack.c.bf16 %v467_v49, %v466_v48  ;;  %1832 = vmatprep.subr.bf16.mxu0 %v1981_v52 }
 0x201   :  { %v474_v22 = vpack.c.bf16 %v465_v51, %v464_v50 }
 0x203   :  { %1790 = vmatprep.mubr.bf16.mxu0 %v474_v22  ;;  %1833 = vmatpush3.bf16.msra.mxu0 %v1981_v52 }
 0x204   :  { %1791 = vmatmul.mubr.bf16.gmra.mrb[28].mxu0 %v475_v20  ;;  %1834 = vmatprep.subr.bf16.mxu0 %v1982_v11 }
 0x207   :  { %1835 = vmatpush3.bf16.msra.mxu0 %v1982_v11 }
 0x208   :  { %1836 = vmatprep.subr.bf16.mxu0 %v1983_v53 }
 0x20b   :  { %1837 = vmatpush3.bf16.msra.mxu0 %v1983_v53 }
 0x2bf   :  { %v1780_v55 = vpop.f32.mrb[16].mxu0 }
 0x2c0   :  { %v2353_v56 = vadd.f32 %v1780_v55, %v1495_v54  ;;  %v581_v57 = vpop.f32.mrb[17].mxu0  ;;  %v767_v55 = vstv %s766_s19 }
 0x2c1   :  { %v2355_v58 = vadd.f32 %v1495_v54, %v581_v57  ;;  %v1781_v59 = vpop.f32.mrb[18].mxu0 }
 0x2c2   :  { %v2357_v60 = vadd.f32 %v1781_v59, %v1495_v54  ;;  %v584_v61 = vpop.f32.mrb[19].mxu0  ;;  %v646_v63 = vmax.f32 %v2353_v56, 0.0 }
 0x2c3   :  { %v2359_v62 = vadd.f32 %v1495_v54, %v584_v61  ;;  %v644_v0 = vmax.f32 %v2355_v58, 0.0 }
 0x2c4   :  { %v647_v2 = vmax.f32 %v2357_v60, 0.0  ;;  %v770_v57 = vmul.f32 %v767_v55, %v646_v63 }
 0x2c5   :  { %v645_v1 = vmax.f32 %v2359_v62, 0.0  ;;  %v768_v61 = vmul.f32 %v767_v55, %v644_v0 }
 0x2c6   :  { %v661_v3 = vpack.c.bf16 %v647_v2, %v646_v63 }
 0x2c7   :  { %v660_v4 = vpack.c.bf16 %v645_v1, %v644_v0  ;;  %v1784_v5 = vpop.f32.mrb[20].mxu0 }
 0x2c8   :  { %v2373_v9 = vadd.f32 %v1784_v5, %v1495_v54  ;;  %v597_v12 = vpop.f32.mrb[21].mxu0  ;;  %v771_v5 = vmul.f32 %v767_v55, %v647_v2 }
 0x2c9   :  { %v2375_v16 = vadd.f32 %v1495_v54, %v597_v12  ;;  %v1785_v18 = vpop.f32.mrb[22].mxu0  ;;  %1794 = vmatprep.subr.bf16.mxu1 %v660_v4 }
 0x2ca   :  { %v2377_v19 = vadd.f32 %v1785_v18, %v1495_v54  ;;  %v600_v8 = vpop.f32.mrb[23].mxu0  ;;  %1795 = vmatpush3.bf16.msra.mxu1 %v660_v4  ;;  %v650_v21 = vmax.f32 %v2373_v9, 0.0 }
 0x2cb   :  { %v2379_v10 = vadd.f32 %v1495_v54, %v600_v8  ;;  %1796 = vmatprep.subr.bf16.mxu1 %v661_v3  ;;  %v648_v7 = vmax.f32 %v2375_v16, 0.0  ;;  %v769_v8 = vmul.f32 %v767_v55, %v645_v1 }
 0x2cc   :  { %v651_v6 = vmax.f32 %v2377_v19, 0.0  ;;  %v774_v63 = vmul.f32 %v767_v55, %v650_v21 }
 0x2cd   :  { %v649_v23 = vmax.f32 %v2379_v10, 0.0  ;;  %v772_v0 = vmul.f32 %v767_v55, %v648_v7 }
 0x2ce   :  { %v663_v26 = vpack.c.bf16 %v651_v6, %v650_v21  ;;  %1797 = vmatpush3.bf16.msra.mxu1 %v661_v3  ;;  %v775_v62 = vmul.f32 %v767_v55, %v651_v6 }
 0x2cf   :  { %v662_v27 = vpack.c.bf16 %v649_v23, %v648_v7  ;;  %v1788_v28 = vpop.f32.mrb[24].mxu0 }
 0x2d0   :  { %v2393_v29 = vadd.f32 %v1788_v28, %v1495_v54  ;;  %v613_v30 = vpop.f32.mrb[25].mxu0 }
 0x2d1   :  { %v2395_v38 = vadd.f32 %v1495_v54, %v613_v30  ;;  %v1789_v39 = vpop.f32.mrb[26].mxu0  ;;  %1798 = vmatprep.subr.bf16.mxu1 %v662_v27 }
 0x2d2   :  { %v2397_v40 = vadd.f32 %v1789_v39, %v1495_v54  ;;  %v616_v15 = vpop.f32.mrb[27].mxu0  ;;  %1799 = vmatpush3.bf16.msra.mxu1 %v662_v27  ;;  %v654_v41 = vmax.f32 %v2393_v29, 0.0 }
 0x2d3   :  { %v2399_v17 = vadd.f32 %v1495_v54, %v616_v15  ;;  %1800 = vmatprep.subr.bf16.mxu1 %v663_v26  ;;  %v652_v14 = vmax.f32 %v2395_v38, 0.0  ;;  %v773_v15 = vmul.f32 %v767_v55, %v649_v23 }
 0x2d4   :  { %v655_v13 = vmax.f32 %v2397_v40, 0.0  ;;  %v778_v16 = vmul.f32 %v767_v55, %v654_v41 }
 0x2d5   :  { %v653_v42 = vmax.f32 %v2399_v17, 0.0 }
 0x2d6   :  { %v665_v43 = vpack.c.bf16 %v655_v13, %v654_v41  ;;  %1801 = vmatpush3.bf16.msra.mxu1 %v663_v26  ;;  %v779_v10 = vmul.f32 %v767_v55, %v655_v13 }
 0x2d7   :  { %v664_v44 = vpack.c.bf16 %v653_v42, %v652_v14  ;;  %v1792_v45 = vpop.f32.mrb[28].mxu0 }
 0x2d8   :  { %v2413_v47 = vadd.f32 %v1792_v45, %v1495_v54  ;;  %v629_v48 = vpop.f32.mrb[29].mxu0 }
 0x2d9   :  { %v2415_v49 = vadd.f32 %v1495_v54, %v629_v48  ;;  %v1793_v50 = vpop.f32.mrb[30].mxu0  ;;  %1802 = vmatprep.subr.bf16.mxu1 %v664_v44  ;;  %v776_v48 = vmul.f32 %v767_v55, %v652_v14 }
 0x2da   :  { %v2417_v51 = vadd.f32 %v1793_v50, %v1495_v54  ;;  %v632_v20 = vpop.f32.mrb[31].mxu0  ;;  %1803 = vmatpush3.bf16.msra.mxu1 %v664_v44  ;;  %v658_v25 = vmax.f32 %v2413_v47, 0.0 }
 0x2db   :  { %v2419_v22 = vadd.f32 %v1495_v54, %v632_v20  ;;  %1804 = vmatprep.subr.bf16.mxu1 %v665_v43  ;;  %v656_v24 = vmax.f32 %v2415_v49, 0.0  ;;  %v1984_v54 = vld [vmem:[%s2611_s4 + $0x70] sm:$0xff]   ;;  %v777_v20 = vmul.f32 %v767_v55, %v653_v42 }
 0x2dc   :  { %v659_v46 = vmax.f32 %v2417_v51, 0.0  ;;  %1838 = vmatprep.subr.bf16.mxu0 %v1984_v54  ;;  %v782_v38 = vmul.f32 %v767_v55, %v658_v25  ;;  %v1992_v49 = vld [vmem:[%s2613_s6 + $0x70] sm:$0xff]   ;;  %v1993_v51 = vld [vmem:[%s2613_s6 + $0x78] sm:$0xff]  }
 0x2dd   :  { %v657_v52 = vmax.f32 %v2419_v22, 0.0  ;;  %1839 = vmatpush3.bf16.msra.mxu0 %v1984_v54  ;;  %v1522_v22 = vld [vmem:[%s2612_s5 + $0x1] ss:$0 sm:$0xff] }
 0x2de   :  { %v667_v11 = vpack.c.bf16 %v659_v46, %v658_v25  ;;  %1805 = vmatpush3.bf16.msra.mxu1 %v665_v43  ;;  %v783_v17 = vmul.f32 %v767_v55, %v659_v46 }
 0x2df   :  { %v666_v53 = vpack.c.bf16 %v657_v52, %v656_v24 }
 0x2e1   :  { %1806 = vmatprep.subr.bf16.mxu1 %v666_v53 }
 0x2e2   :  { %1807 = vmatpush3.bf16.msra.mxu1 %v666_v53 }
 0x2e3   :  { %1808 = vmatprep.subr.bf16.mxu1 %v667_v11 }
 0x2e6   :  { %1809 = vmatpush3.bf16.msra.mxu1 %v667_v11 }
 0x2e9   :  { %1811 = vmatmul.mubr.bf16.vlgmr.msra.gmra.mrb[16].mxu1 %v2243_v31  ;;  %v1985_v31 = vld [vmem:[%s2611_s4 + $0x78] sm:$0xff]  }
 0x2ea   :  { %1814 = vmatprep.mubr.bf16.mxu1 %v2248_v32  ;;  %1840 = vmatprep.subr.bf16.mxu0 %v1985_v31  ;;  %v1986_v32 = vld [vmem:[%s2613_s6 + $0x40] sm:$0xff]  }
 0x2eb   :  { %1841 = vmatpush3.bf16.msra.mxu0 %v1985_v31  ;;  %1858 = vmatprep.subr.bf16.mxu1 %v1986_v32  ;;  %v780_v31 = vmul.f32 %v767_v55, %v656_v24 }
 0x2ec   :  { %1859 = vmatpush3.bf16.msra.mxu1 %v1986_v32 }
 0x2f1   :  { %1815 = vmatmul.mubr.bf16.gmra.mrb[20].mxu1 %v2255_v33  ;;  %v1987_v33 = vld [vmem:[%s2613_s6 + $0x48] sm:$0xff]  }
 0x2f2   :  { %1818 = vmatprep.mubr.bf16.mxu1 %v2260_v34  ;;  %1860 = vmatprep.subr.bf16.mxu1 %v1987_v33  ;;  %v1988_v34 = vld [vmem:[%s2613_s6 + $0x50] sm:$0xff]  }
 0x2f3   :  { %1861 = vmatpush3.bf16.msra.mxu1 %v1987_v33  ;;  %v781_v33 = vmul.f32 %v767_v55, %v657_v52 }
 0x2f4   :  { %1862 = vmatprep.subr.bf16.mxu1 %v1988_v34 }
 0x2f7   :  { %1863 = vmatpush3.bf16.msra.mxu1 %v1988_v34 }
 0x2f9   :  { %1819 = vmatmul.mubr.bf16.gmra.mrb[24].mxu1 %v2267_v35  ;;  %v1989_v35 = vld [vmem:[%s2613_s6 + $0x58] sm:$0xff]  }
 0x2fa   :  { %1822 = vmatprep.mubr.bf16.mxu1 %v2272_v36  ;;  %1864 = vmatprep.subr.bf16.mxu1 %v1989_v35  ;;  %v1990_v36 = vld [vmem:[%s2613_s6 + $0x60] sm:$0xff]  }
 0x2fb   :  { %1865 = vmatpush3.bf16.msra.mxu1 %v1989_v35 }
 0x2fc   :  { %1866 = vmatprep.subr.bf16.mxu1 %v1990_v36 }
 0x2ff   :  { %1867 = vmatpush3.bf16.msra.mxu1 %v1990_v36 }
 0x301   :  { %1823 = vmatmul.mubr.bf16.gmra.mrb[28].mxu1 %v2279_v37  ;;  %v1991_v37 = vld [vmem:[%s2613_s6 + $0x68] sm:$0xff]  }
 0x302   :  { %1868 = vmatprep.subr.bf16.mxu1 %v1991_v37 }
 0x303   :  { %1869 = vmatpush3.bf16.msra.mxu1 %v1991_v37 }
 0x304   :  { %1870 = vmatprep.subr.bf16.mxu1 %v1992_v49 }
 0x307   :  { %1871 = vmatpush3.bf16.msra.mxu1 %v1992_v49  ;;  %v1998_v49 = vld [vmem:[%s2615_s8 + $0x20] sm:$0xff]  }
 0x308   :  { %1872 = vmatprep.subr.bf16.mxu1 %v1993_v51 }
 0x30b   :  { %1873 = vmatpush3.bf16.msra.mxu1 %v1993_v51  ;;  %v1999_v51 = vld [vmem:[%s2615_s8 + $0x28] sm:$0xff]  }
 0x3bc   :  { %v1812_v59 = vpop.f32.mrb[16].mxu1 }
 0x3bd   :  { %v786_v3 = vadd.f32 %v1812_v59, %v770_v57  ;;  %v702_v4 = vpop.f32.mrb[17].mxu1 }
 0x3be   :  { %v784_v12 = vadd.f32 %v768_v61, %v702_v4  ;;  %v1813_v18 = vpop.f32.mrb[18].mxu1 }
 0x3bf   :  { %v787_v26 = vadd.f32 %v1813_v18, %v771_v5  ;;  %v705_v27 = vpop.f32.mrb[19].mxu1 }
 0x3c0   :  { %v785_v28 = vadd.f32 %v769_v8, %v705_v27 }
 0x3c1   :  { %v801_v30 = vpack.c.bf16 %v787_v26, %v786_v3 }
 0x3c2   :  { %v800_v56 = vpack.c.bf16 %v785_v28, %v784_v12 }
 0x3c4   :  { %v1816_v58 = vpop.f32.mrb[20].mxu1  ;;  %1842 = vmatprep.mubr.bf16.mxu0 %v800_v56 }
 0x3c5   :  { %v790_v60 = vadd.f32 %v1816_v58, %v774_v63  ;;  %v718_v2 = vpop.f32.mrb[21].mxu1  ;;  %1843 = vmatmul.mubr.bf16.vlgmr.msra.gmra.mrb[32].mxu0 %v801_v30 }
 0x3c6   :  { %v788_v1 = vadd.f32 %v772_v0, %v718_v2  ;;  %v1817_v39 = vpop.f32.mrb[22].mxu1 }
 0x3c7   :  { %v791_v43 = vadd.f32 %v1817_v39, %v775_v62  ;;  %v721_v44 = vpop.f32.mrb[23].mxu1 }
 0x3c8   :  { %v789_v9 = vadd.f32 %v773_v15, %v721_v44 }
 0x3c9   :  { %v803_v21 = vpack.c.bf16 %v791_v43, %v790_v60 }
 0x3ca   :  { %v802_v45 = vpack.c.bf16 %v789_v9, %v788_v1 }
 0x3cc   :  { %v1820_v7 = vpop.f32.mrb[24].mxu1  ;;  %1846 = vmatprep.mubr.bf16.mxu0 %v802_v45 }
 0x3cd   :  { %v794_v19 = vadd.f32 %v1820_v7, %v778_v16  ;;  %v734_v6 = vpop.f32.mrb[25].mxu1  ;;  %1847 = vmatmul.mubr.bf16.gmra.mrb[36].mxu0 %v803_v21 }
 0x3ce   :  { %v792_v23 = vadd.f32 %v776_v48, %v734_v6  ;;  %v1821_v50 = vpop.f32.mrb[26].mxu1 }
 0x3cf   :  { %v795_v11 = vadd.f32 %v1821_v50, %v779_v10  ;;  %v737_v53 = vpop.f32.mrb[27].mxu1 }
 0x3d0   :  { %v793_v29 = vadd.f32 %v777_v20, %v737_v53 }
 0x3d1   :  { %v805_v41 = vpack.c.bf16 %v795_v11, %v794_v19 }
 0x3d2   :  { %v804_v54 = vpack.c.bf16 %v793_v29, %v792_v23 }
 0x3d4   :  { %v1824_v14 = vpop.f32.mrb[28].mxu1  ;;  %1850 = vmatprep.mubr.bf16.mxu0 %v804_v54 }
 0x3d5   :  { %v798_v40 = vadd.f32 %v1824_v14, %v782_v38  ;;  %v750_v13 = vpop.f32.mrb[29].mxu1  ;;  %1851 = vmatmul.mubr.bf16.gmra.mrb[40].mxu0 %v805_v41 }
 0x3d6   :  { %v796_v42 = vadd.f32 %v780_v31, %v750_v13  ;;  %v1825_v32 = vpop.f32.mrb[30].mxu1 }
 0x3d7   :  { %v799_v34 = vadd.f32 %v1825_v32, %v783_v17  ;;  %v753_v35 = vpop.f32.mrb[31].mxu1 }
 0x3d8   :  { %v797_v47 = vadd.f32 %v781_v33, %v753_v35  ;;  %v1994_v35 = vld [vmem:[%s2615_s8] sm:$0xff]  }
 0x3d9   :  { %v807_v25 = vpack.c.bf16 %v799_v34, %v798_v40  ;;  %v2049_v34 = vmov 0.0  }
 0x3da   :  { %v806_v36 = vpack.c.bf16 %v797_v47, %v796_v42  ;;  %1890 = vmatprep.subr.bf16.mxu0 %v2049_v34  ;;  %1910 = vmatprep.subr.bf16.mxu1 %v2049_v34  ;;  %v1995_v47 = vld [vmem:[%s2615_s8 + $0x8] sm:$0xff]  }
 0x3dc   :  { %1854 = vmatprep.mubr.bf16.mxu0 %v806_v36  ;;  %v1997_v36 = vld [vmem:[%s2615_s8 + $0x18] sm:$0xff]  }
 0x3dd   :  { %1855 = vmatmul.mubr.bf16.gmra.mrb[44].mxu0 %v807_v25  ;;  %v1996_v25 = vld [vmem:[%s2615_s8 + $0x10] sm:$0xff]  }
 0x3de   :  { %1906 = vmatprep.mubr.msk.bf16.mxu0 %vm2050_vm0, %v2049_v34 }
 0x498   :  { %v1844_v46 = vpop.f32.mrb[32].mxu0 }
 0x499   :  { %v924_v24 = vadd.f32 %v1844_v46, %v1522_v22  ;;  %v915_v52 = vpop.f32.mrb[33].mxu0  ;;  %v1548_v46 = vld [vmem:[%s2614_s7 + $0x1] ss:$0 sm:$0xff] }
 0x49a   :  { %v916_v37 = vadd.f32 %v1522_v22, %v915_v52  ;;  %v1845_v55 = vpop.f32.mrb[34].mxu0 }
 0x49b   :  { %v927_v57 = vadd.f32 %v1845_v55, %v1522_v22  ;;  %v918_v59 = vpop.f32.mrb[35].mxu0  ;;  %v980_v3 = vmax.f32 %v924_v24, 0.0 }
 0x49c   :  { %v919_v61 = vadd.f32 %v1522_v22, %v918_v59  ;;  %v978_v5 = vmax.f32 %v916_v37, 0.0 }
 0x49d   :  { %v981_v4 = vmax.f32 %v927_v57, 0.0 }
 0x49e   :  { %v979_v12 = vmax.f32 %v919_v61, 0.0 }
 0x49f   :  { %v995_v18 = vpack.c.bf16 %v981_v4, %v980_v3 }
 0x4a0   :  { %v994_v8 = vpack.c.bf16 %v979_v12, %v978_v5  ;;  %v1848_v26 = vpop.f32.mrb[36].mxu0 }
 0x4a1   :  { %v940_v27 = vadd.f32 %v1848_v26, %v1522_v22  ;;  %v931_v28 = vpop.f32.mrb[37].mxu0 }
 0x4a2   :  { %v932_v30 = vadd.f32 %v1522_v22, %v931_v28  ;;  %v1849_v56 = vpop.f32.mrb[38].mxu0  ;;  %1874 = vmatprep.mubr.bf16.mxu1 %v994_v8 }
 0x4a3   :  { %v943_v63 = vadd.f32 %v1849_v56, %v1522_v22  ;;  %v934_v58 = vpop.f32.mrb[39].mxu0  ;;  %1875 = vmatmul.mubr.bf16.vlgmr.msra.gmra.mrb[32].mxu1 %v995_v18  ;;  %v984_v60 = vmax.f32 %v940_v27, 0.0 }
 0x4a4   :  { %v935_v0 = vadd.f32 %v1522_v22, %v934_v58  ;;  %v982_v62 = vmax.f32 %v932_v30, 0.0  ;;  %1911 = vmatpush3.bf16.msra.mxu1 %v1994_v35 }
 0x4a5   :  { %v985_v2 = vmax.f32 %v943_v63, 0.0  ;;  %1912 = vmatprep.subr.bf16.mxu1 %v2049_v34 }
 0x4a6   :  { %v983_v1 = vmax.f32 %v935_v0, 0.0 }
 0x4a7   :  { %v997_v39 = vpack.c.bf16 %v985_v2, %v984_v60 }
 0x4a8   :  { %v996_v15 = vpack.c.bf16 %v983_v1, %v982_v62  ;;  %v1852_v43 = vpop.f32.mrb[40].mxu0  ;;  %1913 = vmatpush3.bf16.msra.mxu1 %v1995_v47  ;;  %v1188_v47 = vld [vmem:[%s2610_s3] sm:$0x1] }
 0x4a9   :  { %v956_v44 = vadd.f32 %v1852_v43, %v1522_v22  ;;  %v947_v9 = vpop.f32.mrb[41].mxu0  ;;  %1914 = vmatprep.subr.bf16.mxu1 %v2049_v34 }
 0x4aa   :  { %v948_v21 = vadd.f32 %v1522_v22, %v947_v9  ;;  %v1853_v45 = vpop.f32.mrb[42].mxu0  ;;  %1878 = vmatprep.mubr.bf16.mxu1 %v996_v15 }
 0x4ab   :  { %v959_v16 = vadd.f32 %v1853_v45, %v1522_v22  ;;  %v950_v7 = vpop.f32.mrb[43].mxu0  ;;  %1879 = vmatmul.mubr.bf16.gmra.mrb[36].mxu1 %v997_v39  ;;  %v988_v19 = vmax.f32 %v956_v44, 0.0 }
 0x4ac   :  { %v951_v48 = vadd.f32 %v1522_v22, %v950_v7  ;;  %v986_v10 = vmax.f32 %v948_v21, 0.0  ;;  %1915 = vmatpush3.bf16.msra.mxu1 %v1996_v25  ;;  %v2001_v25 = vld [vmem:[%s2615_s8 + $0x38] sm:$0xff]  }
 0x4ad   :  { %v989_v6 = vmax.f32 %v959_v16, 0.0  ;;  %1916 = vmatprep.subr.bf16.mxu1 %v2049_v34 }
 0x4ae   :  { %v987_v23 = vmax.f32 %v951_v48, 0.0 }
 0x4af   :  { %v999_v50 = vpack.c.bf16 %v989_v6, %v988_v19 }
 0x4b0   :  { %v998_v20 = vpack.c.bf16 %v987_v23, %v986_v10  ;;  %v1856_v11 = vpop.f32.mrb[44].mxu0  ;;  %1917 = vmatpush3.bf16.msra.mxu1 %v1997_v36  ;;  %v2002_v36 = vld [vmem:[%s2617_s10] sm:$0xff]  }
 0x4b1   :  { %v972_v53 = vadd.f32 %v1856_v11, %v1522_v22  ;;  %v963_v29 = vpop.f32.mrb[45].mxu0  ;;  %1918 = vmatprep.subr.bf16.mxu1 %v2049_v34 }
 0x4b2   :  { %v964_v41 = vadd.f32 %v1522_v22, %v963_v29  ;;  %v1857_v54 = vpop.f32.mrb[46].mxu0  ;;  %1882 = vmatprep.mubr.bf16.mxu1 %v998_v20 }
 0x4b3   :  { %v975_v38 = vadd.f32 %v1857_v54, %v1522_v22  ;;  %v966_v14 = vpop.f32.mrb[47].mxu0  ;;  %1883 = vmatmul.mubr.bf16.gmra.mrb[40].mxu1 %v999_v50  ;;  %v992_v40 = vmax.f32 %v972_v53, 0.0 }
 0x4b4   :  { %v967_v31 = vadd.f32 %v1522_v22, %v966_v14  ;;  %v990_v17 = vmax.f32 %v964_v41, 0.0  ;;  %1919 = vmatpush3.bf16.msra.mxu1 %v1998_v49  ;;  %v2000_v22 = vld [vmem:[%s2615_s8 + $0x30] sm:$0xff]   ;;  %v2003_v49 = vld [vmem:[%s2617_s10 + $0x8] sm:$0xff]  }
 0x4b5   :  { %v993_v13 = vmax.f32 %v975_v38, 0.0  ;;  %1920 = vmatprep.subr.bf16.mxu1 %v2049_v34 }
 0x4b6   :  { %v991_v42 = vmax.f32 %v967_v31, 0.0 }
 0x4b7   :  { %v1001_v32 = vpack.c.bf16 %v993_v13, %v992_v40 }
 0x4b8   :  { %v1000_v33 = vpack.c.bf16 %v991_v42, %v990_v17  ;;  %1921 = vmatpush3.bf16.msra.mxu1 %v1999_v51  ;;  %v2004_v51 = vld [vmem:[%s2617_s10 + $0x10] sm:$0xff]  }
 0x4b9   :  { %1922 = vmatprep.subr.bf16.mxu1 %v2049_v34 }
 0x4ba   :  { %1886 = vmatprep.mubr.bf16.mxu1 %v1000_v33 }
 0x4bb   :  { %1887 = vmatmul.mubr.bf16.gmra.mrb[44].mxu1 %v1001_v32 }
 0x4bc   :  { %1926 = vmatprep.mubr.msk.bf16.mxu1 %vm2050_vm0, %v2049_v34  ;;  %1923 = vmatpush3.bf16.msra.mxu1 %v2000_v22  ;;  %v2005_v22 = vld [vmem:[%s2617_s10 + $0x18] sm:$0xff]  }
 0x4bd   :  { %1924 = vmatprep.subr.bf16.mxu1 %v2049_v34 }
 0x4c0   :  { %1925 = vmatpush3.bf16.msra.mxu1 %v2001_v25 }
 0x576   :  { %v1876_v24 = vpop.f32.mrb[32].mxu1 }
 0x577   :  { %v1118_v52 = vadd.f32 %v1876_v24, %v1548_v46  ;;  %v1109_v37 = vpop.f32.mrb[33].mxu1  ;;  %v2007_v24 = vld [vmem:[%s2617_s10 + $0x28] sm:$0xff]  }
 0x578   :  { %v1110_v55 = vadd.f32 %v1548_v46, %v1109_v37  ;;  %v1877_v57 = vpop.f32.mrb[34].mxu1 }
 0x579   :  { %v1121_v59 = vadd.f32 %v1877_v57, %v1548_v46  ;;  %v1112_v61 = vpop.f32.mrb[35].mxu1  ;;  %v1174_v4 = vmax.f32 %v1118_v52, 0.0 }
 0x57a   :  { %v1113_v3 = vadd.f32 %v1548_v46, %v1112_v61  ;;  %v1172_v12 = vmax.f32 %v1110_v55, 0.0  ;;  %v2008_v61 = vld [vmem:[%s2617_s10 + $0x30] sm:$0xff]  }
 0x57b   :  { %v1175_v5 = vmax.f32 %v1121_v59, 0.0 }
 0x57c   :  { %v1173_v18 = vmax.f32 %v1113_v3, 0.0  ;;  %v2009_v3 = vld [vmem:[%s2617_s10 + $0x38] sm:$0xff]  }
 0x57d   :  { %v1190_v8 = vpack.c.bf16 %v1175_v5, %v1174_v4  ;;  %v1557_v4 = vld [vmem:[%s2616_s9] ss:$0 sm:$0xff]  ;;  %s2022_s9 = scalar_lea.vmem %s1470_s16, 32 }
 0x57e   :  { %v1189_v26 = vpack.c.bf16 %v1173_v18, %v1172_v12  ;;  %v1880_v27 = vpop.f32.mrb[36].mxu1  ;;  %p2023_p5 = scmp.ne.s32.totalorder %s1470_s16, %s2022_s9  ;;  %p2028_p7 = scmp.lt.s32.totalorder %s2022_s9, %s2022_s9 }
 0x57f   :  { %v1134_v28 = vadd.f32 %v1880_v27, %v1548_v46  ;;  %v1125_v30 = vpop.f32.mrb[37].mxu1 }
 0x580   :  { %v1126_v56 = vadd.f32 %v1548_v46, %v1125_v30  ;;  %v1881_v63 = vpop.f32.mrb[38].mxu1  ;;  %1891 = vmatpush3.bf16.msra.mxu0 %v1189_v26  ;;  %p2029_p8 = por %p2028_p7, %p2027_p6 }
 0x581   :  { %v1137_v58 = vadd.f32 %v1881_v63, %v1548_v46  ;;  %v1128_v0 = vpop.f32.mrb[39].mxu1  ;;  %1892 = vmatprep.subr.bf16.mxu0 %v2049_v34  ;;  %v1178_v2 = vmax.f32 %v1134_v28, 0.0 }
 0x582   :  { %v1129_v60 = vadd.f32 %v1548_v46, %v1128_v0  ;;  %v1176_v1 = vmax.f32 %v1126_v56, 0.0  ;;  %p2030_p9 = pnand %p2029_p8, %p2023_p5 }
 0x583   :  { %v1179_v62 = vmax.f32 %v1137_v58, 0.0 }
 0x584   :  { %v1177_v39 = vmax.f32 %v1129_v60, 0.0  ;;  %1893 = vmatpush3.bf16.msra.mxu0 %v1190_v8 }
 0x585   :  { %v1192_v15 = vpack.c.bf16 %v1179_v62, %v1178_v2  ;;  %1894 = vmatprep.subr.bf16.mxu0 %v2049_v34 }
 0x586   :  { %v1191_v43 = vpack.c.bf16 %v1177_v39, %v1176_v1  ;;  %v1884_v44 = vpop.f32.mrb[40].mxu1 }
 0x587   :  { %v1150_v9 = vadd.f32 %v1884_v44, %v1548_v46  ;;  %v1141_v21 = vpop.f32.mrb[41].mxu1 }
 0x588   :  { %v1142_v45 = vadd.f32 %v1548_v46, %v1141_v21  ;;  %v1885_v16 = vpop.f32.mrb[42].mxu1  ;;  %1895 = vmatpush3.bf16.msra.mxu0 %v1191_v43 }
 0x589   :  { %v1153_v7 = vadd.f32 %v1885_v16, %v1548_v46  ;;  %v1144_v48 = vpop.f32.mrb[43].mxu1  ;;  %1896 = vmatprep.subr.bf16.mxu0 %v2049_v34  ;;  %v1182_v6 = vmax.f32 %v1150_v9, 0.0 }
 0x58a   :  { %v1145_v19 = vadd.f32 %v1548_v46, %v1144_v48  ;;  %v1180_v23 = vmax.f32 %v1142_v45, 0.0 }
 0x58b   :  { %v1183_v10 = vmax.f32 %v1153_v7, 0.0 }
 0x58c   :  { %v1181_v50 = vmax.f32 %v1145_v19, 0.0  ;;  %1897 = vmatpush3.bf16.msra.mxu0 %v1192_v15 }
 0x58d   :  { %v1194_v20 = vpack.c.bf16 %v1183_v10, %v1182_v6  ;;  %1898 = vmatprep.subr.bf16.mxu0 %v2049_v34 }
 0x58e   :  { %v1193_v11 = vpack.c.bf16 %v1181_v50, %v1180_v23  ;;  %v1888_v53 = vpop.f32.mrb[44].mxu1 }
 0x58f   :  { %v1166_v29 = vadd.f32 %v1888_v53, %v1548_v46  ;;  %v1157_v41 = vpop.f32.mrb[45].mxu1 }
 0x590   :  { %v1158_v54 = vadd.f32 %v1548_v46, %v1157_v41  ;;  %v1889_v38 = vpop.f32.mrb[46].mxu1  ;;  %1899 = vmatpush3.bf16.msra.mxu0 %v1193_v11 }
 0x591   :  { %v1169_v14 = vadd.f32 %v1889_v38, %v1548_v46  ;;  %v1160_v31 = vpop.f32.mrb[47].mxu1  ;;  %1900 = vmatprep.subr.bf16.mxu0 %v2049_v34  ;;  %v1186_v13 = vmax.f32 %v1166_v29, 0.0 }
 0x592   :  { %v1161_v40 = vadd.f32 %v1548_v46, %v1160_v31  ;;  %v1184_v42 = vmax.f32 %v1158_v54, 0.0  ;;  %v2006_v46 = vld [vmem:[%s2617_s10 + $0x20] sm:$0xff]  }
 0x593   :  { %v1187_v17 = vmax.f32 %v1169_v14, 0.0 }
 0x594   :  { %v1185_v32 = vmax.f32 %v1161_v40, 0.0  ;;  %1901 = vmatpush3.bf16.msra.mxu0 %v1194_v20 }
 0x595   :  { %v1196_v33 = vpack.c.bf16 %v1187_v17, %v1186_v13  ;;  %1902 = vmatprep.subr.bf16.mxu0 %v2049_v34 }
 0x596   :  { %v1195_v35 = vpack.c.bf16 %v1185_v32, %v1184_v42 }
 0x598   :  { %1903 = vmatpush3.bf16.msra.mxu0 %v1195_v35 }
 0x599   :  { %1904 = vmatprep.subr.bf16.mxu0 %v2049_v34 }
 0x59c   :  { %1905 = vmatpush3.bf16.msra.mxu0 %v1196_v33 }
 0x59d   :  { %1930 = vmatprep.subr.bf16.mxu0 %v2049_v34 }
 0x59f   :  { %1907 = vmatmul.mubr.bf16.vlgmr.msra.gmra.mrb[48].mxu0 %v1188_v47 }
 0x5a0   :  { %1946 = vmatprep.mubr.msk.bf16.mxu0 %vm2050_vm0, %v2049_v34  ;;  %1931 = vmatpush3.bf16.msra.mxu0 %v2002_v36 }
 0x5a1   :  { %1932 = vmatprep.subr.bf16.mxu0 %v2049_v34 }
 0x5a4   :  { %1933 = vmatpush3.bf16.msra.mxu0 %v2003_v49 }
 0x5a5   :  { %1934 = vmatprep.subr.bf16.mxu0 %v2049_v34 }
 0x5a8   :  { %1935 = vmatpush3.bf16.msra.mxu0 %v2004_v51 }
 0x5a9   :  { %1936 = vmatprep.subr.bf16.mxu0 %v2049_v34 }
 0x5ac   :  { %1937 = vmatpush3.bf16.msra.mxu0 %v2005_v22 }
 0x5ad   :  { %1938 = vmatprep.subr.bf16.mxu0 %v2049_v34 }
 0x5b0   :  { %1939 = vmatpush3.bf16.msra.mxu0 %v2006_v46 }
 0x5b1   :  { %1940 = vmatprep.subr.bf16.mxu0 %v2049_v34 }
 0x5b4   :  { %1941 = vmatpush3.bf16.msra.mxu0 %v2007_v24 }
 0x5b5   :  { %1942 = vmatprep.subr.bf16.mxu0 %v2049_v34 }
 0x5b8   :  { %1943 = vmatpush3.bf16.msra.mxu0 %v2008_v61 }
 0x5b9   :  { %1944 = vmatprep.subr.bf16.mxu0 %v2049_v34  ;;  %v1566_v34 = vld [vmem:[%s2618_s11] ss:$0 sm:$0xff] }
 0x5bc   :  { %1945 = vmatpush3.bf16.msra.mxu0 %v2009_v3 }
 0x672   :  { %v1231_v52 = vpop.f32.mrb[48].mxu0 }
 0x673   :  { %v1237_v37 = vpack.c.bf16 %v1231_v52, %v1231_v52  ;;  %v1908_v55 = vpop.f32.mrb[49].mxu0 }
 0x674   :  { %v1234_v57 = vpop.f32.mrb[50].mxu0 }
 0x675   :  { %v1909_v59 = vpop.f32.mrb[51].mxu0  ;;  %1927 = vmatmul.mubr.bf16.vlgmr.msra.gmra.mrb[48].mxu1 %v1237_v37 }
 0x748   :  { %v1343_v5 = vpop.f32.mrb[48].mxu1 }
 0x749   :  { %v1344_v12 = vadd.f32 %v1557_v4, %v1343_v5  ;;  %v1928_v18 = vpop.f32.mrb[49].mxu1 }
 0x74a   :  { %v1346_v8 = vpop.f32.mrb[50].mxu1 }
 0x74b   :  { %v1349_v26 = vmax.f32 %v1344_v12, 0.0  ;;  %v1929_v27 = vpop.f32.mrb[51].mxu1 }
 0x74d   :  { %v1350_v28 = vpack.c.bf16 %v1349_v26, %v1349_v26 }
 0x74f   :  { %1947 = vmatmul.mubr.bf16.vlgmr.msra.gmra.mrb[52].mxu0 %v1350_v28 }
 0x822   :  { %v1456_v30 = vpop.f32.mrb[52].mxu0 }
 0x823   :  { %v1457_v56 = vadd.f32 %v1566_v34, %v1456_v30  ;;  %v1948_v63 = vpop.f32.mrb[53].mxu0 }
 0x824   :  { %v1459_v58 = vpop.f32.mrb[54].mxu0 }
 0x825   :  { %1462 = vst [vmem:[#allocation5] sm:$0x3] %v1457_v56  ;;  %v1949_v0 = vpop.f32.mrb[55].mxu0 }
 0x826   :  { %2033 = shalt.err (!%p2030_p9)
}
 0x827   :  { %s2034_s11 = scalar_lea.hbm %s2619_s12, 32 }
 0x828   :  { %p2035_p10 = scmp.ne.s32.totalorder %s2619_s12, %s2034_s11  ;;  %p2038_p11 = scmp.lt.u32.totalorder %s2034_s11, %s2619_s12 }
 0x82a   :  { %p2040_p12 = pnand %p2038_p11, %p2035_p10 }
 0x82c   :  { %2043 = shalt.err (!%p2040_p12)
}
 0x82d   :  { %1472 = dma.vmem_to_hbm [thread:$0]  %s1470_s16, 32, %s2619_s12, [#allocation3]  }
 0x82e   :  { %2046 = dma.done.wait [#allocation3], 32  }
 0x82f   :  { %2047 = vsyncadd [#allocation3], 4294967264 }
 0x830   :  { %1476 = vsyncpa [#allocation3], 1 }
 0x831   :  { %1477 = vsyncpa [#allocation4], 1 }

</bundles_post_ra>
